<compile_context>
chip_gen: v7x
topology: tpu7x:2x2x1
jax: 0.10.0
libtpu: 0.0.40
codegen_flags: <defaults>
</compile_context>

<pallas_src>
import functools

import jax
import jax.numpy as jnp
from jax.experimental import pallas as pl
from jax.experimental.pallas import tpu as pltpu

LN_EPS = 1e-5  # PyTorch nn.LayerNorm default eps


def ffn_layernorm_kernel(x_ref, w1_ref, w2_ref, gb_ref, o_ref, acc_ref):
    # x_ref : (tm, d_model)  row tile, resident across the d_ff axis
    # w1_ref: (d_model, tf)  streamed d_ff chunk of W1
    # w2_ref: (tf, d_model)  streamed d_ff chunk of W2
    # gb_ref: (2, d_model)   row 0 = gamma, row 1 = beta
    # acc_ref: (tm, d_model) f32 accumulator scratch
    k = pl.program_id(1)

    @pl.when(k == 0)
    def _init():
        acc_ref[...] = jnp.zeros_like(acc_ref)

    # Linear 1 chunk (MXU, f32 accumulation) + ReLU (VPU)
    h = jnp.dot(x_ref[...], w1_ref[...], preferred_element_type=jnp.float32)
    h = jnp.maximum(h, 0.0)

    # Linear 2 chunk, accumulate into f32 scratch.
    acc_ref[...] += jnp.dot(h.astype(w2_ref.dtype), w2_ref[...],
                            preferred_element_type=jnp.float32)

    @pl.when(k == pl.num_programs(1) - 1)
    def _finalize():
        # Residual add + LayerNorm over last dim (d_model), all in f32.
        z = acc_ref[...] + x_ref[...].astype(jnp.float32)
        mean = jnp.mean(z, axis=-1, keepdims=True)
        centered = z - mean
        var = jnp.mean(centered * centered, axis=-1, keepdims=True)
        norm = centered * jax.lax.rsqrt(var + LN_EPS)
        gamma = gb_ref[0:1, :].astype(jnp.float32)
        beta = gb_ref[1:2, :].astype(jnp.float32)
        o_ref[...] = (norm * gamma + beta).astype(o_ref.dtype)


@functools.partial(jax.jit, static_argnames=("tm", "tf"))
def poswise_ffn(x, w1, w2, gamma, beta, *, tm=None, tf=None):
    """x: [batch, seq, d_model] -> [batch, seq, d_model]"""
    b, s, d_model = x.shape
    d_ff = w1.shape[1]
    m = b * s
    x2d = x.reshape(m, d_model)

    # Row tile: 256 fills the v6e/v7x MXU M dimension and amortizes per-step
    # overhead; fall back to the full extent for small problems.
    if tm is None:
        tm = m if m <= 256 else 256
    assert m % tm == 0, "batch*seq must be divisible by the row tile"

    # d_ff chunk: stream weights so VMEM use is independent of d_ff.
    if tf is None:
        tf = d_ff if d_ff <= 512 else 512
    assert d_ff % tf == 0, "d_ff must be divisible by the d_ff chunk"

    # gamma/beta packed into one (2, d_model) array -> single DMA descriptor.
    gb = jnp.stack([gamma, beta], axis=0)

    itemsize = jnp.dtype(x.dtype).itemsize
    cost = pl.CostEstimate(
        flops=4 * m * d_model * d_ff + 10 * m * d_model,
        transcendentals=m,  # one rsqrt per row
        bytes_accessed=(m * d_model * itemsize * 2          # x in, out
                        + d_model * d_ff * w1.dtype.itemsize
                        + d_ff * d_model * w2.dtype.itemsize
                        + 2 * d_model * gb.dtype.itemsize),
    )

    out2d = pl.pallas_call(
        ffn_layernorm_kernel,
        out_shape=jax.ShapeDtypeStruct((m, d_model), x.dtype),
        grid_spec=pltpu.PrefetchScalarGridSpec(
            num_scalar_prefetch=0,
            grid=(m // tm, d_ff // tf),              # rows, then d_ff (reduction last)
            in_specs=[
                pl.BlockSpec((tm, d_model), lambda i, k: (i, 0)),   # x rows
                pl.BlockSpec((d_model, tf), lambda i, k: (0, k)),   # W1 chunk
                pl.BlockSpec((tf, d_model), lambda i, k: (k, 0)),   # W2 chunk
                pl.BlockSpec((2, d_model), lambda i, k: (0, 0)),    # gamma/beta
            ],
            out_specs=pl.BlockSpec((tm, d_model), lambda i, k: (i, 0)),
            scratch_shapes=[pltpu.VMEM((tm, d_model), jnp.float32)],
        ),
        compiler_params=pltpu.CompilerParams(
            dimension_semantics=("parallel", "arbitrary"),
            vmem_limit_bytes=48 * 1024 * 1024,  # under v7x's 64 MiB physical
        ),
        cost_estimate=cost,
    )(x2d, w1, w2, gb)

    return out2d.reshape(b, s, d_model)


def reference(x, w1, w2, gamma, beta):
    h = jnp.maximum(x.astype(jnp.float32) @ w1.astype(jnp.float32), 0.0)
    y = h @ w2.astype(jnp.float32)
    z = y + x.astype(jnp.float32)
    mean = jnp.mean(z, axis=-1, keepdims=True)
    var = jnp.mean((z - mean) ** 2, axis=-1, keepdims=True)
    out = (z - mean) / jnp.sqrt(var + LN_EPS) * gamma + beta
    return out.astype(x.dtype)


if __name__ == "__main__":
    # Small shapes consistent with the module's forward:
    # inputs: [batch_size, seq_len, d_model]
    batch, seq, d_model, d_ff = 2, 8, 32, 64

    key = jax.random.PRNGKey(0)
    kx, k1, k2 = jax.random.split(key, 3)

    x = jax.random.normal(kx, (batch, seq, d_model), dtype=jnp.float32)
    # nn.Linear(bias=False) weights; LayerNorm affine defaults (weight=1, bias=0).
    w1 = jax.random.normal(k1, (d_model, d_ff), dtype=jnp.float32) * 0.05
    w2 = jax.random.normal(k2, (d_ff, d_model), dtype=jnp.float32) * 0.05
    gamma = jnp.ones((d_model,), dtype=jnp.float32)
    beta = jnp.zeros((d_model,), dtype=jnp.float32)

    out = poswise_ffn(x, w1, w2, gamma, beta)
    out = jax.block_until_ready(out)

    ref = reference(x, w1, w2, gamma, beta)
    assert out.shape == (batch, seq, d_model)
    assert jnp.allclose(out, ref, atol=1e-5, rtol=1e-5), "mismatch vs reference"

    print("KERNEL_OK")
</pallas_src>

<mosaic_0001>
module attributes {stable_mosaic.version = 11 : i64} {
  func.func @ffn_layernorm_kernel(%arg0: i32, %arg1: i32, %arg2: memref<16x32xf32, #tpu.memory_space<vmem>>, %arg3: memref<32x64xf32, #tpu.memory_space<vmem>>, %arg4: memref<64x32xf32, #tpu.memory_space<vmem>>, %arg5: memref<2x32xf32, #tpu.memory_space<vmem>>, %arg6: memref<16x32xf32, #tpu.memory_space<vmem>>, %arg7: memref<16x32xf32, #tpu.memory_space<vmem>>) attributes {dimension_semantics = [#tpu.dimension_semantics<parallel>, #tpu.dimension_semantics<arbitrary>], iteration_bounds = array<i64: 1, 1>, scalar_prefetch = 0 : i64, scratch_operands = 1 : i64, tpu.core_type = #tpu.core_type<tc>, window_params = [{transform_indices = @transform_0, window_bounds = array<i64: 16, 32>}, {transform_indices = @transform_1, window_bounds = array<i64: 32, 64>}, {transform_indices = @transform_2, window_bounds = array<i64: 64, 32>}, {pipeline_mode = #tpu.pipeline_mode<synchronous>, transform_indices = @transform_3, window_bounds = array<i64: 2, 32>}, {transform_indices = @transform_4, window_bounds = array<i64: 16, 32>}]} {
    %c0_i32 = arith.constant 0 : i32
    %0 = arith.cmpi eq, %arg1, %c0_i32 : i32
    %1 = arith.extui %0 : i1 to i32
    %c0_i32_0 = arith.constant 0 : i32
    %2 = arith.cmpi ne, %1, %c0_i32_0 : i32
    scf.if %2 {
      %cst_14 = arith.constant 0.000000e+00 : f32
      %16 = vector.broadcast %cst_14 : f32 to vector<16x32xf32>
      %c0_15 = arith.constant 0 : index
      %c0_16 = arith.constant 0 : index
      %17 = vector.load %arg7[%c0_15, %c0_16] : memref<16x32xf32, #tpu.memory_space<vmem>>, vector<16x32xf32>
      tpu.vector_store %arg7[%c0_15, %c0_16], %16 {strides = array<i32>} : memref<16x32xf32, #tpu.memory_space<vmem>>, vector<16x32xf32>,
    } else {
    }
    %c0 = arith.constant 0 : index
    %c0_1 = arith.constant 0 : index
    %3 = vector.load %arg2[%c0, %c0_1] : memref<16x32xf32, #tpu.memory_space<vmem>>, vector<16x32xf32>
    %c0_2 = arith.constant 0 : index
    %c0_3 = arith.constant 0 : index
    %4 = vector.load %arg3[%c0_2, %c0_3] : memref<32x64xf32, #tpu.memory_space<vmem>>, vector<32x64xf32>
    %cst = arith.constant dense<0.000000e+00> : vector<16x64xf32>
    %5 = tpu.matmul %3, %4, %cst {dimension_numbers = #tpu.dot_dimension_numbers<[1], [0], [0], [1], [0, 0, 1, 1], [], []>} : vector<16x32xf32>, vector<32x64xf32>, vector<16x64xf32> -> vector<16x64xf32>
    %cst_4 = arith.constant 0.000000e+00 : f32
    %6 = vector.broadcast %cst_4 : f32 to vector<16x64xf32>
    %7 = arith.maximumf %5, %6 : vector<16x64xf32>
    %c0_5 = arith.constant 0 : index
    %c0_6 = arith.constant 0 : index
    %8 = vector.load %arg7[%c0_5, %c0_6] : memref<16x32xf32, #tpu.memory_space<vmem>>, vector<16x32xf32>
    %c0_7 = arith.constant 0 : index
    %c0_8 = arith.constant 0 : index
    %9 = vector.load %arg4[%c0_7, %c0_8] : memref<64x32xf32, #tpu.memory_space<vmem>>, vector<64x32xf32>
    %cst_9 = arith.constant dense<0.000000e+00> : vector<16x32xf32>
    %10 = tpu.matmul %7, %9, %cst_9 {dimension_numbers = #tpu.dot_dimension_numbers<[1], [0], [0], [1], [0, 0, 1, 1], [], []>} : vector<16x64xf32>, vector<64x32xf32>, vector<16x32xf32> -> vector<16x32xf32>
    %11 = arith.addf %8, %10 : vector<16x32xf32>
    %c0_10 = arith.constant 0 : index
    %c0_11 = arith.constant 0 : index
    %12 = vector.load %arg7[%c0_10, %c0_11] : memref<16x32xf32, #tpu.memory_space<vmem>>, vector<16x32xf32>
    tpu.vector_store %arg7[%c0_10, %c0_11], %11 {strides = array<i32>} : memref<16x32xf32, #tpu.memory_space<vmem>>, vector<16x32xf32>,
    %c0_i32_12 = arith.constant 0 : i32
    %13 = arith.cmpi eq, %arg1, %c0_i32_12 : i32
    %14 = arith.extui %13 : i1 to i32
    %c0_i32_13 = arith.constant 0 : i32
    %15 = arith.cmpi ne, %14, %c0_i32_13 : i32
    scf.if %15 {
      %c0_14 = arith.constant 0 : index
      %c0_15 = arith.constant 0 : index
      %16 = vector.load %arg7[%c0_14, %c0_15] : memref<16x32xf32, #tpu.memory_space<vmem>>, vector<16x32xf32>
      %c0_16 = arith.constant 0 : index
      %c0_17 = arith.constant 0 : index
      %17 = vector.load %arg2[%c0_16, %c0_17] : memref<16x32xf32, #tpu.memory_space<vmem>>, vector<16x32xf32>
      %18 = arith.addf %16, %17 : vector<16x32xf32>
      %cst_18 = arith.constant dense<0.000000e+00> : vector<16xf32>
      %19 = vector.multi_reduction <add>, %18, %cst_18 [1] : vector<16x32xf32> to vector<16xf32>
      %20 = vector.shape_cast %19 : vector<16xf32> to vector<16x1xf32>
      %cst_19 = arith.constant 3.200000e+01 : f32
      %21 = vector.broadcast %cst_19 : f32 to vector<16x1xf32>
      %22 = arith.divf %20, %21 : vector<16x1xf32>
      %23 = vector.broadcast %22 : vector<16x1xf32> to vector<16x32xf32>
      %24 = arith.subf %18, %23 : vector<16x32xf32>
      %25 = arith.mulf %24, %24 : vector<16x32xf32>
      %cst_20 = arith.constant dense<0.000000e+00> : vector<16xf32>
      %26 = vector.multi_reduction <add>, %25, %cst_20 [1] : vector<16x32xf32> to vector<16xf32>
      %27 = vector.shape_cast %26 : vector<16xf32> to vector<16x1xf32>
      %cst_21 = arith.constant 3.200000e+01 : f32
      %28 = vector.broadcast %cst_21 : f32 to vector<16x1xf32>
      %29 = arith.divf %27, %28 : vector<16x1xf32>
      %cst_22 = arith.constant 9.99999974E-6 : f32
      %30 = vector.broadcast %cst_22 : f32 to vector<16x1xf32>
      %31 = arith.addf %29, %30 : vector<16x1xf32>
      %32 = math.rsqrt %31 : vector<16x1xf32>
      %33 = vector.broadcast %32 : vector<16x1xf32> to vector<16x32xf32>
      %34 = arith.mulf %24, %33 : vector<16x32xf32>
      %c0_23 = arith.constant 0 : index
      %c0_24 = arith.constant 0 : index
      %35 = vector.load %arg5[%c0_23, %c0_24] : memref<2x32xf32, #tpu.memory_space<vmem>>, vector<1x32xf32>
      %c1 = arith.constant 1 : index
      %c0_25 = arith.constant 0 : index
      %36 = vector.load %arg5[%c1, %c0_25] : memref<2x32xf32, #tpu.memory_space<vmem>>, vector<1x32xf32>
      %37 = vector.broadcast %35 : vector<1x32xf32> to vector<16x32xf32>
      %38 = arith.mulf %34, %37 : vector<16x32xf32>
      %39 = vector.broadcast %36 : vector<1x32xf32> to vector<16x32xf32>
      %40 = arith.addf %38, %39 : vector<16x32xf32>
      %c0_26 = arith.constant 0 : index
      %c0_27 = arith.constant 0 : index
      %41 = vector.load %arg6[%c0_26, %c0_27] : memref<16x32xf32, #tpu.memory_space<vmem>>, vector<16x32xf32>
      tpu.vector_store %arg6[%c0_26, %c0_27], %40 {strides = array<i32>} : memref<16x32xf32, #tpu.memory_space<vmem>>, vector<16x32xf32>,
    } else {
    }
    return
  }
  func.func @transform_0(%arg0: i32, %arg1: i32) -> (i32, i32) {
    %c0_i32 = arith.constant 0 : i32
    %c0_i32_0 = arith.constant 0 : i32
    return %arg0, %c0_i32 : i32, i32
  }
  func.func @transform_1(%arg0: i32, %arg1: i32) -> (i32, i32) {
    %c0_i32 = arith.constant 0 : i32
    %c0_i32_0 = arith.constant 0 : i32
    return %c0_i32, %arg1 : i32, i32
  }
  func.func @transform_2(%arg0: i32, %arg1: i32) -> (i32, i32) {
    %c0_i32 = arith.constant 0 : i32
    %c0_i32_0 = arith.constant 0 : i32
    return %arg1, %c0_i32 : i32, i32
  }
  func.func @transform_3(%arg0: i32, %arg1: i32) -> (i32, i32) {
    %c0_i32 = arith.constant 0 : i32
    %c0_i32_0 = arith.constant 0 : i32
    %c0_i32_1 = arith.constant 0 : i32
    return %c0_i32, %c0_i32_0 : i32, i32
  }
  func.func @transform_4(%arg0: i32, %arg1: i32) -> (i32, i32) {
    %c0_i32 = arith.constant 0 : i32
    %c0_i32_0 = arith.constant 0 : i32
    return %arg0, %c0_i32 : i32, i32
  }
}

</mosaic_0001>

<bundles_post_ra>
// kernel: poswise_ffn.1
= control target key start
LH: loop header
LB: loop body
LE: loop exit
PB: predicated region body
PF: predicated region fallthrough
CT: control target
= control target key end

     0   :  { %vm22_vm0 = vcmask 261120   ;;  %s488_s0 = inlined_call_operand.vmem [shape: f32[16,32], index: 0, kind: input, shape index: {}]   ;;  %s489_s1 = inlined_call_operand.vmem [shape: f32[32,64], index: 1, kind: input, shape index: {}]   ;;  %s490_s2 = inlined_call_operand.vmem [shape: f32[64,32], index: 2, kind: input, shape index: {}]   ;;  %s491_s3 = inlined_call_operand.vmem [shape: f32[2,32], index: 3, kind: input, shape index: {}]   ;;  %s492_s4 = inlined_call_operand.hbm [shape: f32[16,32], index: 4, kind: output, shape index: {}]  }
   0x1   :  { %v27_v0 = vld [vmem:[%s489_s1] sm:$0xff]  ;;  %v28_v1 = vld [vmem:[%s489_s1 + $0x8] sm:$0xff]  ;;  %v29_v2 = vld [vmem:[%s489_s1 + $0x10] sm:$0xff] }
   0x2   :  { %v331_v3 = vpack.c.bf16 %v28_v1, %v27_v0  ;;  %v30_v4 = vld [vmem:[%s489_s1 + $0x18] sm:$0xff]  ;;  %v25_v5 = vld [vmem:[%s488_s0] sm:$0xff]  ;;  %v118_v8 = vld [vmem:[%s490_s2 + $0x8] sm:$0xff] }
   0x3   :  { %v335_v6 = vpack.c.bf16 %v30_v4, %v29_v2  ;;  %309 = vmatprep.mubr.msk.f32.mxu0 %vm22_vm0, %v25_v5  ;;  %v117_v7 = vld [vmem:[%s490_s2] sm:$0xff]  ;;  %v119_v9 = vld [vmem:[%s490_s2 + $0x10] sm:$0xff]  ;;  %v120_v11 = vld [vmem:[%s490_s2 + $0x18] sm:$0xff] }
   0x4   :  { %332 = vmatprep.subr.bf16.mxu0 %v331_v3  ;;  %v339_v10 = vpack.c.bf16 %v118_v8, %v117_v7  ;;  %v343_v12 = vpack.c.bf16 %v120_v11, %v119_v9  ;;  %v121_v13 = vld [vmem:[%s490_s2 + $0x20] sm:$0xff]  ;;  %v122_v14 = vld [vmem:[%s490_s2 + $0x28] sm:$0xff] }
   0x5   :  { %334 = vmatpush3.bf16.msra.mxu0 %v331_v3 }
   0x6   :  { %9 = vsyncpa [#allocation4], 0  ;;  %336 = vmatprep.subr.bf16.mxu0 %v335_v6  ;;  %340 = vmatprep.subr.bf16.mxu1 %v339_v10  ;;  %v347_v15 = vpack.c.bf16 %v122_v14, %v121_v13  ;;  %v26_v16 = vld [vmem:[%s488_s0 + $0x8] sm:$0xff]  ;;  %v123_v17 = vld [vmem:[%s490_s2 + $0x30] sm:$0xff]  ;;  %v387_v20 = vmov 0.0   ;;  %vm125_vm1 = vcmask 523264  }
   0x7   :  { %342 = vmatpush3.bf16.msra.mxu1 %v339_v10  ;;  %v124_v18 = vld [vmem:[%s490_s2 + $0x38] sm:$0xff]  ;;  %24 = vst.msk [vmem:[#allocation2 + $0x8] sm:$0xff] %vm22_vm0, %v387_v20  ;;  %23 = vst.msk [vmem:[#allocation2] sm:$0xff] %vm22_vm0, %v387_v20  ;;  %v283_v54 = vld [vmem:[%s491_s3] ss:$0 sm:$0xff]  ;;  %s388_s18 = smov [#allocation3]  }
   0x8   :  { %344 = vmatprep.subr.bf16.mxu1 %v343_v12  ;;  %v351_v19 = vpack.c.bf16 %v124_v18, %v123_v17  ;;  %v284_v56 = vld [vmem:[%s491_s3 + $0x1] ss:$0 sm:$0xff]  ;;  %s268_s19 = sshll.u32 %s388_s18, 4  ;;  %s269_s19 = int_to_ptr.vmem [resolvable:$true] %s268_s19 }
   0x9   :  { %338 = vmatpush3.bf16.msra.mxu0 %v335_v6  ;;  %s363_s20 = scalar_lea.vmem %s269_s19, 256  ;;  %p368_p1 = scmp.lt.s32.totalorder %s269_s19, %s269_s19 }
   0xa   :  { %p364_p0 = scmp.ne.s32.totalorder %s269_s19, %s363_s20  ;;  %p369_p2 = scmp.lt.s32.totalorder %s363_s20, %s363_s20 }
   0xb   :  { %346 = vmatpush3.bf16.msra.mxu1 %v343_v12 }
   0xc   :  { %310 = vmatmul.mubr.msk.f32.vlgmr.msra.gmra.mrb[0].mxu0 %vm22_vm0, %v26_v16  ;;  %348 = vmatprep.subr.bf16.mxu1 %v347_v15  ;;  %p370_p3 = por %p369_p2, %p368_p1 }
   0xe   :  { %v116_v25 = vld [vmem:[#allocation2 + $0x8] sm:$0xff]  ;;  %v115_v26 = vld [vmem:[#allocation2] sm:$0xff]  ;;  %p371_p4 = pnand %p370_p3, %p364_p0 }
   0xf   :  { %350 = vmatpush3.bf16.msra.mxu1 %v347_v15 }
  0x10   :  { %352 = vmatprep.subr.bf16.mxu1 %v351_v19 }
  0x13   :  { %354 = vmatpush3.bf16.msra.mxu1 %v351_v19 }
  0xdf   :  { %v311_v21 = vpop.f32.mrb[0].mxu0 }
  0xe0   :  { %v104_v22 = vpop.f32.mrb[1].mxu0  ;;  %v114_v24 = vmax.f32 %v311_v21, 0.0 }
  0xe1   :  { %v113_v23 = vmax.f32 %v104_v22, 0.0 }
  0xe3   :  { %328 = vmatprep.mubr.msk.f32.mxu1 %vm125_vm1, %v113_v23 }
  0xe4   :  { %329 = vmatmul.mubr.msk.f32.vlgmr.msra.gmra.mrb[0].mxu1 %vm125_vm1, %v114_v24 }
 0x1b7   :  { %v330_v27 = vpop.f32.mrb[0].mxu1 }
 0x1b8   :  { %v208_v28 = vadd.f32 %v330_v27, %v116_v25  ;;  %v198_v29 = vpop.f32.mrb[1].mxu1 }
 0x1b9   :  { %v207_v30 = vadd.f32 %v198_v29, %v115_v26 }
 0x1ba   :  { %210 = vst.msk [vmem:[#allocation2 + $0x8] sm:$0xff] %vm22_vm0, %v208_v28 }
 0x1bb   :  { %209 = vst.msk [vmem:[#allocation2] sm:$0xff] %vm22_vm0, %v207_v30 }
 0x1c1   :  { %v215_v32 = vld [vmem:[#allocation2 + $0x8] sm:$0xff] }
 0x1c2   :  { %v214_v31 = vld [vmem:[#allocation2] sm:$0xff]  ;;  %v219_v35 = vadd.f32 %v215_v32, %v26_v16 }
 0x1c3   :  { %v218_v33 = vadd.f32 %v214_v31, %v25_v5 }
 0x1c4   :  { %v223_v36 = vsel %vm22_vm0, %v219_v35, 0.0 }
 0x1c5   :  { %v220_v34 = vsel %vm22_vm0, %v218_v33, 0.0 }
 0x1c6   :  { %221 = vadd.xlane.f32.xlu0 %v220_v34 }
 0x1ca   :  { %224 = vadd.xlane.f32.xlu0 %v223_v36 }
 0x253   :  { %v222_v37 = vpop.xlane.xlu0 %221 }
 0x254   :  { %v227_v38 = vmul.f32 0.03125, %v222_v37 }
 0x256   :  { %v229_v39 = vsub.f32 %v218_v33, %v227_v38 }
 0x257   :  { %v225_v40 = vpop.xlane.xlu0 %224 }
 0x258   :  { %v228_v41 = vmul.f32 0.03125, %v225_v40  ;;  %v231_v42 = vmul.f32 %v229_v39, %v229_v39 }
 0x25a   :  { %v230_v43 = vsub.f32 %v219_v35, %v228_v41  ;;  %v233_v44 = vsel %vm22_vm0, %v231_v42, 0.0 }
 0x25b   :  { %234 = vadd.xlane.f32.xlu1 %v233_v44 }
 0x25c   :  { %v232_v45 = vmul.f32 %v230_v43, %v230_v43 }
 0x25e   :  { %v236_v46 = vsel %vm22_vm0, %v232_v45, 0.0 }
 0x25f   :  { %237 = vadd.xlane.f32.xlu1 %v236_v46 }
 0x2e8   :  { %v235_v47 = vpop.xlane.xlu1 %234 }
 0x2e9   :  { %v239_v48 = vmul.f32 0.03125, %v235_v47 }
 0x2eb   :  { %v241_v49 = vadd.f32 1e-05, %v239_v48 }
 0x2ec   :  { %v238_v50 = vpop.xlane.xlu1 %237 }
 0x2ed   :  { %359 = vrsqrt.f32 %v241_v49  ;;  %v240_v51 = vmul.f32 0.03125, %v238_v50 }
 0x2ef   :  { %v242_v52 = vadd.f32 1e-05, %v240_v51 }
 0x2f1   :  { %361 = vrsqrt.f32 %v242_v52 }
 0x2f7   :  { %v360_v53 = vpop.eup %359 }
 0x2f8   :  { %v245_v55 = vmul.f32 %v360_v53, %v229_v39 }
 0x2fa   :  { %v253_v57 = vmul.f32 %v283_v54, %v245_v55 }
 0x2fb   :  { %v362_v58 = vpop.eup %361 }
 0x2fc   :  { %v246_v59 = vmul.f32 %v362_v58, %v230_v43  ;;  %v259_v60 = vadd.f32 %v284_v56, %v253_v57 }
 0x2fe   :  { %v254_v61 = vmul.f32 %v283_v54, %v246_v59  ;;  %261 = vst.msk [vmem:[#allocation3] sm:$0xff] %vm22_vm0, %v259_v60 }
 0x300   :  { %v260_v62 = vadd.f32 %v284_v56, %v254_v61 }
 0x302   :  { %262 = vst.msk [vmem:[#allocation3 + $0x8] sm:$0xff] %vm22_vm0, %v260_v62 }
 0x303   :  { %374 = shalt.err (!%p371_p4)
}
 0x304   :  { %s375_s22 = scalar_lea.hbm %s492_s4, 256 }
 0x305   :  { %p376_p5 = scmp.ne.s32.totalorder %s492_s4, %s375_s22  ;;  %p379_p6 = scmp.lt.u32.totalorder %s375_s22, %s492_s4 }
 0x307   :  { %p381_p7 = pnand %p379_p6, %p376_p5 }
 0x309   :  { %384 = shalt.err (!%p381_p7)
}
 0x30a   :  { %s389_s27 = smov 128   ;;  %s390_s28 = smov 8  }
 0x30b   :  { %274 = dma.vmem_to_hbm [thread:$0]  %s269_s19, 256, %s492_s4, [#allocation4], %s389_s27, %s389_s27, %s390_s28  }
 0x30c   :  { %385 = dma.done.wait [#allocation4], 256  }
 0x30d   :  { %386 = vsyncadd [#allocation4], 4294967040 }
 0x30e   :  { %278 = vsyncpa [#allocation4], 1 }

</bundles_post_ra>
